<compile_context>
chip_gen: v7x
topology: tpu7x:2x2x1
jax: 0.10.0
libtpu: 0.0.40
codegen_flags: <defaults>
</compile_context>

<pallas_src>
import functools
import math

import jax
import jax.numpy as jnp
from jax import lax
from jax.experimental import pallas as pl
from jax.experimental.pallas import tpu as pltpu

P_DROP = 0.1


def _hash_u32(x):
    """splitmix32-style 32-bit avalanche mixer (VPU-only integer ops)."""
    x = (x ^ (x >> 16)) * jnp.uint32(0x7FEB352D)
    x = (x ^ (x >> 15)) * jnp.uint32(0x846CA68B)
    x = x ^ (x >> 16)
    return x


def _pe_dropout_kernel(seed_ref, x_ref, pe_ref, o_ref, *, p_drop, training):
    # x_ref: (TS, B, D) VMEM tile; pe_ref: (TS, 1, D) VMEM tile; seed_ref: (1,) SMEM.
    x = x_ref[...]
    y = x + pe_ref[...].astype(x.dtype)  # broadcast add over the batch axis

    if training and p_drop > 0.0:
        ts, b, d = x_ref.shape
        s0 = pl.program_id(0) * ts  # global row offset of this tile
        i0 = lax.broadcasted_iota(jnp.int32, (ts, b, d), 0) + s0
        i1 = lax.broadcasted_iota(jnp.int32, (ts, b, d), 1)
        i2 = lax.broadcasted_iota(jnp.int32, (ts, b, d), 2)
        # Unique (mod 2^32) global element counter -> mask differs per tile.
        ctr = ((i0 * (b * d)) + (i1 * d) + i2).astype(jnp.uint32)
        key = (seed_ref[0].astype(jnp.uint32) * jnp.uint32(0x9E3779B9)
               + jnp.uint32(0x85EBCA6B))
        bits = _hash_u32(_hash_u32(ctr ^ key) + jnp.uint32(0x9E3779B9))
        # Integer-threshold Bernoulli: drop iff bits < round(p * 2^32).
        thr = jnp.uint32(min(int(round(p_drop * 2.0 ** 32)), 2 ** 32 - 1))
        keep = bits >= thr
        scale = jnp.asarray(1.0 / (1.0 - p_drop), dtype=y.dtype)
        y = jnp.where(keep, y * scale, jnp.zeros_like(y))

    o_ref[...] = y.astype(o_ref.dtype)


def make_positional_encoding_table(d_model, max_len=5000, dtype=jnp.float32):
    """Deterministic buffer identical to the PyTorch __init__: (max_len, 1, d_model)."""
    position = jnp.arange(0, max_len, dtype=jnp.float32)[:, None]
    div_term = jnp.exp(
        jnp.arange(0, d_model, 2, dtype=jnp.float32) * (-math.log(10000.0) / d_model)
    )
    pe = jnp.zeros((max_len, d_model), dtype=jnp.float32)
    pe = pe.at[:, 0::2].set(jnp.sin(position * div_term))
    pe = pe.at[:, 1::2].set(jnp.cos(position * div_term))
    return pe[:, None, :].astype(dtype)  # (max_len, 1, d_model)


def _choose_tile_s(S, B, D, itemsize, target_bytes=2 << 20):
    """~2 MiB x-tiles: big enough to amortize per-step overhead, small enough
    that double-buffered x+out+pe fits scoped VMEM on v5e/v6e/v7x."""
    rows = max(1, target_bytes // max(1, B * D * itemsize))
    ts = min(S, int(rows))
    if ts >= 8:
        ts = (ts // 8) * 8  # sublane-friendly
    return max(1, ts)


def positional_encoding_forward(x, pe, *, seed=0, p_drop=P_DROP, training=True,
                                tile_s=None):
    """x: (S, B, D); pe: (max_len, 1, D).  Returns dropout(x + pe[:S])."""
    S, B, D = x.shape

    if (not training) or p_drop <= 0.0:
        # Eval / no-dropout path: leave the bare add to XLA so it can fuse into
        # adjacent ops instead of paying a standalone HBM round trip.
        return (x + pe[:S].astype(x.dtype)).astype(x.dtype)

    if tile_s is None:
        tile_s = _choose_tile_s(S, B, D, x.dtype.itemsize)
    tile_s = max(1, min(int(tile_s), S))

    seed_arr = jnp.asarray([seed], dtype=jnp.int32)
    kernel = functools.partial(_pe_dropout_kernel, p_drop=float(p_drop), training=True)

    return pl.pallas_call(
        kernel,
        out_shape=jax.ShapeDtypeStruct((S, B, D), x.dtype),
        grid_spec=pltpu.PrefetchScalarGridSpec(
            num_scalar_prefetch=1,                       # seed -> SMEM
            grid=(pl.cdiv(S, tile_s),),
            in_specs=[
                pl.BlockSpec((tile_s, B, D), lambda s, seed: (s, 0, 0)),  # x
                pl.BlockSpec((tile_s, 1, D), lambda s, seed: (s, 0, 0)),  # pe window
            ],
            out_specs=pl.BlockSpec((tile_s, B, D), lambda s, seed: (s, 0, 0)),
        ),
        compiler_params=pltpu.CompilerParams(
            dimension_semantics=("parallel",),
        ),
    )(seed_arr, x, pe)


if __name__ == "__main__":
    S, B, D = 8, 2, 32          # seq=8, batch=2, d_model=32
    MAX_LEN = 64
    P = 0.1

    key = jax.random.PRNGKey(0)
    x = jax.random.normal(key, (S, B, D), dtype=jnp.float32)
    pe = make_positional_encoding_table(D, max_len=MAX_LEN)

    # Training-mode forward through the Pallas kernel.
    # tile_s=4 forces a 2-tile grid so the per-tile mask / index maps are exercised.
    out_train = positional_encoding_forward(x, pe, seed=0, p_drop=P,
                                            training=True, tile_s=4)
    jax.block_until_ready(out_train)
    assert out_train.shape == (S, B, D)

    # Property check: every element is either exactly 0 (dropped) or
    # (x + pe[:S]) / (1 - p) (kept).
    ref = x + pe[:S]
    scale = 1.0 / (1.0 - P)
    dropped = out_train == 0.0
    kept_err = jnp.where(dropped, 0.0, out_train - ref * scale)
    assert jnp.allclose(kept_err, 0.0, atol=1e-5), "kept values mismatch vs (x+pe)*scale"
    keep_frac = 1.0 - float(jnp.mean(dropped.astype(jnp.float32)))
    assert 0.6 < keep_frac < 0.995, f"suspicious keep fraction {keep_frac}"

    # Eval-mode forward (dropout = identity) bypasses Pallas; check vs reference.
    out_eval = positional_encoding_forward(x, pe, seed=0, p_drop=P, training=False)
    jax.block_until_ready(out_eval)
    assert jnp.allclose(out_eval, ref, atol=1e-6), "eval-mode mismatch vs reference"

    print("KERNEL_OK")
</pallas_src>

<mosaic_0001>
module attributes {stable_mosaic.version = 11 : i64} {
  func.func @_pe_dropout_kernel(%arg0: i32, %arg1: memref<1xi32, #tpu.memory_space<smem>>, %arg2: memref<4x2x32xf32, #tpu.memory_space<vmem>>, %arg3: memref<4x1x32xf32, #tpu.memory_space<vmem>>, %arg4: memref<4x2x32xf32, #tpu.memory_space<vmem>>) attributes {dimension_semantics = [#tpu.dimension_semantics<parallel>], iteration_bounds = array<i64: 2>, scalar_prefetch = 1 : i64, scratch_operands = 0 : i64, tpu.core_type = #tpu.core_type<tc>, window_params = [{transform_indices = @transform_0, window_bounds = array<i64: 4, 2, 32>}, {transform_indices = @transform_1, window_bounds = array<i64: 4, 1, 32>}, {transform_indices = @transform_2, window_bounds = array<i64: 4, 2, 32>}]} {
    %c0 = arith.constant 0 : index
    %c0_0 = arith.constant 0 : index
    %c0_1 = arith.constant 0 : index
    %0 = vector.load %arg2[%c0, %c0_0, %c0_1] : memref<4x2x32xf32, #tpu.memory_space<vmem>>, vector<4x2x32xf32>
    %c0_2 = arith.constant 0 : index
    %c0_3 = arith.constant 0 : index
    %c0_4 = arith.constant 0 : index
    %1 = vector.load %arg3[%c0_2, %c0_3, %c0_4] : memref<4x1x32xf32, #tpu.memory_space<vmem>>, vector<4x1x32xf32>
    %2 = vector.broadcast %1 : vector<4x1x32xf32> to vector<4x2x32xf32>
    %3 = arith.addf %0, %2 : vector<4x2x32xf32>
    %c4_i32 = arith.constant 4 : i32
    %4 = arith.muli %arg0, %c4_i32 : i32
    %5 = tpu.iota {dimensions = array<i32: 0>} : vector<4x2x32xi32>
    %6 = vector.broadcast %4 : i32 to vector<4x2x32xi32>
    %7 = arith.addi %5, %6 : vector<4x2x32xi32>
    %8 = tpu.iota {dimensions = array<i32: 1>} : vector<4x2x32xi32>
    %9 = tpu.iota {dimensions = array<i32: 2>} : vector<4x2x32xi32>
    %c64_i32 = arith.constant 64 : i32
    %10 = vector.broadcast %c64_i32 : i32 to vector<4x2x32xi32>
    %11 = arith.muli %7, %10 : vector<4x2x32xi32>
    %c32_i32 = arith.constant 32 : i32
    %12 = vector.broadcast %c32_i32 : i32 to vector<4x2x32xi32>
    %13 = arith.muli %8, %12 : vector<4x2x32xi32>
    %14 = arith.addi %11, %13 : vector<4x2x32xi32>
    %15 = arith.addi %14, %9 : vector<4x2x32xi32>
    %c0_5 = arith.constant 0 : index
    %16 = memref.load %arg1[%c0_5] : memref<1xi32, #tpu.memory_space<smem>>
    %c-1640531527_i32 = arith.constant -1640531527 : i32
    %17 = arith.muli %16, %c-1640531527_i32 : i32
    %c-2048144789_i32 = arith.constant -2048144789 : i32
    %18 = arith.addi %17, %c-2048144789_i32 : i32
    %19 = vector.broadcast %18 : i32 to vector<4x2x32xi32>
    %20 = arith.xori %15, %19 : vector<4x2x32xi32>
    %c16_i32 = arith.constant 16 : i32
    %21 = vector.broadcast %c16_i32 : i32 to vector<4x2x32xi32>
    %22 = arith.shrui %20, %21 : vector<4x2x32xi32>
    %23 = arith.xori %20, %22 : vector<4x2x32xi32>
    %c2146121005_i32 = arith.constant 2146121005 : i32
    %24 = vector.broadcast %c2146121005_i32 : i32 to vector<4x2x32xi32>
    %25 = arith.muli %23, %24 : vector<4x2x32xi32>
    %c15_i32 = arith.constant 15 : i32
    %26 = vector.broadcast %c15_i32 : i32 to vector<4x2x32xi32>
    %27 = arith.shrui %25, %26 : vector<4x2x32xi32>
    %28 = arith.xori %25, %27 : vector<4x2x32xi32>
    %c-2073254261_i32 = arith.constant -2073254261 : i32
    %29 = vector.broadcast %c-2073254261_i32 : i32 to vector<4x2x32xi32>
    %30 = arith.muli %28, %29 : vector<4x2x32xi32>
    %c16_i32_6 = arith.constant 16 : i32
    %31 = vector.broadcast %c16_i32_6 : i32 to vector<4x2x32xi32>
    %32 = arith.shrui %30, %31 : vector<4x2x32xi32>
    %33 = arith.xori %30, %32 : vector<4x2x32xi32>
    %c-1640531527_i32_7 = arith.constant -1640531527 : i32
    %34 = vector.broadcast %c-1640531527_i32_7 : i32 to vector<4x2x32xi32>
    %35 = arith.addi %33, %34 : vector<4x2x32xi32>
    %c16_i32_8 = arith.constant 16 : i32
    %36 = vector.broadcast %c16_i32_8 : i32 to vector<4x2x32xi32>
    %37 = arith.shrui %35, %36 : vector<4x2x32xi32>
    %38 = arith.xori %35, %37 : vector<4x2x32xi32>
    %c2146121005_i32_9 = arith.constant 2146121005 : i32
    %39 = vector.broadcast %c2146121005_i32_9 : i32 to vector<4x2x32xi32>
    %40 = arith.muli %38, %39 : vector<4x2x32xi32>
    %c15_i32_10 = arith.constant 15 : i32
    %41 = vector.broadcast %c15_i32_10 : i32 to vector<4x2x32xi32>
    %42 = arith.shrui %40, %41 : vector<4x2x32xi32>
    %43 = arith.xori %40, %42 : vector<4x2x32xi32>
    %c-2073254261_i32_11 = arith.constant -2073254261 : i32
    %44 = vector.broadcast %c-2073254261_i32_11 : i32 to vector<4x2x32xi32>
    %45 = arith.muli %43, %44 : vector<4x2x32xi32>
    %c16_i32_12 = arith.constant 16 : i32
    %46 = vector.broadcast %c16_i32_12 : i32 to vector<4x2x32xi32>
    %47 = arith.shrui %45, %46 : vector<4x2x32xi32>
    %48 = arith.xori %45, %47 : vector<4x2x32xi32>
    %c429496730_i32 = arith.constant 429496730 : i32
    %49 = vector.broadcast %c429496730_i32 : i32 to vector<4x2x32xi32>
    %50 = arith.cmpi uge, %48, %49 : vector<4x2x32xi32>
    %cst = arith.constant 1.11111116 : f32
    %51 = vector.broadcast %cst : f32 to vector<4x2x32xf32>
    %52 = arith.mulf %3, %51 : vector<4x2x32xf32>
    %cst_13 = arith.constant 0.000000e+00 : f32
    %53 = vector.broadcast %cst_13 : f32 to vector<4x2x32xf32>
    %54 = arith.select %50, %52, %53 : vector<4x2x32xi1>, vector<4x2x32xf32>
    %c0_14 = arith.constant 0 : index
    %c0_15 = arith.constant 0 : index
    %c0_16 = arith.constant 0 : index
    %55 = vector.load %arg4[%c0_14, %c0_15, %c0_16] : memref<4x2x32xf32, #tpu.memory_space<vmem>>, vector<4x2x32xf32>
    tpu.vector_store %arg4[%c0_14, %c0_15, %c0_16], %54 {strides = array<i32>} : memref<4x2x32xf32, #tpu.memory_space<vmem>>, vector<4x2x32xf32>,
    return
  }
  func.func @transform_0(%arg0: i32, %arg1: memref<1xi32, #tpu.memory_space<smem>>) -> (i32, i32, i32) {
    %c0_i32 = arith.constant 0 : i32
    %c0_i32_0 = arith.constant 0 : i32
    %c0_i32_1 = arith.constant 0 : i32
    return %arg0, %c0_i32, %c0_i32_0 : i32, i32, i32
  }
  func.func @transform_1(%arg0: i32, %arg1: memref<1xi32, #tpu.memory_space<smem>>) -> (i32, i32, i32) {
    %c0_i32 = arith.constant 0 : i32
    %c0_i32_0 = arith.constant 0 : i32
    %c0_i32_1 = arith.constant 0 : i32
    return %arg0, %c0_i32, %c0_i32_0 : i32, i32, i32
  }
  func.func @transform_2(%arg0: i32, %arg1: memref<1xi32, #tpu.memory_space<smem>>) -> (i32, i32, i32) {
    %c0_i32 = arith.constant 0 : i32
    %c0_i32_0 = arith.constant 0 : i32
    %c0_i32_1 = arith.constant 0 : i32
    return %arg0, %c0_i32, %c0_i32_0 : i32, i32, i32
  }
}

</mosaic_0001>

<bundles_post_ra>
// kernel: tpu_custom_call.1
= control target key start
LH: loop header
LB: loop body
LE: loop exit
PB: predicated region body
PF: predicated region fallthrough
CT: control target
= control target key end

     0   :  { %s672_s0 = inlined_call_operand.<no memory space> [shape: s32[1], index: 0, kind: input, shape index: {}]   ;;  %s673_s1 = inlined_call_operand.vmem [shape: f32[8,2,32], index: 1, kind: input, shape index: {}]   ;;  %s674_s2 = inlined_call_operand.vmem [shape: f32[64,1,32], index: 2, kind: input, shape index: {}]   ;;  %s675_s3 = inlined_call_operand.hbm [shape: f32[8,2,32], index: 3, kind: output, shape index: {}]  }
   0x1   :  { %8 = sst [smem:[#allocation3]] %s672_s0 }
   0x2   :  { %9 = vsyncpa [#allocation5], 0 }
   0x3   :  { %11 = vsyncpa [#allocation5 + $0x1], 0  ;;  %s552_s14 = smov 0   ;;  %s554_s15 = smov 0  }
   0x4   :  { %s556_s16 = smov 0   ;;  %s558_s17 = smov 0  }
   0x5 LB: > { %s573_s0 = sadd.s32 4294967295, %s524_s17   ;;  %s402_s18 = sadd.s32 4294967294, %s524_s17   ;;  %s524_s17 = sphi %s558_s17, %s681_s17   ;;  %s520_s16 = sphi %s556_s16, %s680_s16   ;;  %s516_s15 = sphi %s554_s15, %s679_s15   ;;  %s512_s14 = sphi %s552_s14, %s678_s14  }
   0x6   : > { %s577_s19 = sadd.s32 1, %s524_s17   ;;  %s76_s20 = sadd.s32 1, %s520_s16 }
   0x7   : > { %s73_s21 = ssub.s32 %s524_s17, %s577_s19  ;;  %p86_p0 = scmp.ne.s32.totalorder %s520_s16, %s516_s15 }
   0x8   : > { %p74_p1 = scmp.eq.s32.totalorder %s73_s21, 0  ;;  %p87_p2 = scmp.eq.s32.totalorder %s573_s0, 1 }
   0x9   : > { %p92_p3 = scmp.ne.s32.totalorder %s516_s15, %s512_s14  ;;  %p93_p4 = scmp.eq.s32.totalorder %s402_s18, 1 }
   0xa   : > { %s588_s22 = scalar_select %p74_p1, %s520_s16, %s76_s20  }
   0xb   : > { %p590_p5 = por %p87_p2, %p86_p0  ;;  %p594_p6 = por %p93_p4, %p92_p3 }
   0xc   : > { %p405_p7 = scmp.ge.s32.totalorder %s524_s17, 1  ;;  %p128_p8 = scmp.lt.s32.totalorder %s524_s17, 3 }
   0xe   : > { %p129_p9 = pnand %p405_p7, %p128_p8 }
   0xf   : > { %s601_s25 = sshll.u32 (!%p129_p9), %s573_s0, 2  ;;  %v207_v0 = vlaneseq (!%p129_p9)  ;;  %s224_s26 = sld [smem:[#allocation3]] (!%p129_p9)  ;;  %vm312_vm0 = vcmask (!%p129_p9), 254976  }
  0x10   : > { %132 = sbr.rel (%p129_p9) target bundleno = 79 (0x4f), region = 28  ;;  %v203_v1 = vstv (!%p129_p9), %s601_s25  ;;  %p155_p10 = scmp.lt.s32.totalorder (!%p129_p9), %s601_s25, 7 }
  0x11   : > { %v208_v2 = vshrl.u32 (!%p129_p9), %v207_v0, 7  ;;  %v204_v3 = vadd.s32 (!%p129_p9), 1, %v203_v1  ;;  %v211_v4 = vmul.u32 (!%p129_p9), 64, %v203_v1  ;;  %v205_v5 = vadd.s32 (!%p129_p9), 2, %v203_v1  ;;  %p161_p11 = scmp.lt.s32.totalorder (!%p129_p9), %s601_s25, 63  ;;  %s151_s10 = sand.u32 (!%p129_p9), 1, %s516_s15  }
  0x12   : > { %v206_v6 = vadd.s32 (!%p129_p9), 3, %v203_v1  ;;  %v210_v11 = vand.u32 (!%p129_p9), 127, %v207_v0  ;;  %s406_s11 = sshll.u32 (!%p129_p9), %s151_s10, 3  ;;  %s420_s18 = sshll.u32 (!%p129_p9), %s573_s0, 7 }
  0x13   : > { %v215_v7 = vmul.u32 (!%p129_p9), 32, %v208_v2  ;;  %v212_v8 = vmul.u32 (!%p129_p9), 64, %v204_v3  ;;  %s153_s12 = scalar_lea.vmem (!%p129_p9), [#allocation4], %s406_s11  ;;  %s631_s0 = scalar_lea.sflag (!%p129_p9), [#allocation5], %s151_s10 }
  0x14   : > { %v213_v9 = vmul.u32 (!%p129_p9), 64, %v205_v5  ;;  %v214_v10 = vmul.u32 (!%p129_p9), 64, %v206_v6  ;;  %s331_s13 = sshll.u32 (!%p129_p9), %s153_s12, 4  ;;  %s618_s13 = int_to_ptr.vmem [resolvable:$true] %s331_s13 }
  0x15   : > { %v216_v12 = vadd.s32 (!%p129_p9), %v215_v7, %v211_v4  ;;  %v217_v13 = vadd.s32 (!%p129_p9), %v215_v7, %v212_v8  ;;  %s225_s27 = smul.u32 (!%p129_p9), 2654435769, %s224_s26  ;;  %s462_s26 = scalar_lea.vmem (!%p129_p9), %s618_s13, 128 }
  0x16   : > { %v218_v14 = vadd.s32 (!%p129_p9), %v215_v7, %v213_v9  ;;  %v219_v15 = vadd.s32 (!%p129_p9), %v215_v7, %v214_v10  ;;  %p463_p12 = scmp.ne.s32.totalorder (!%p129_p9), %s618_s13, %s462_s26 }
  0x17   : > { %v220_v16 = vadd.s32 %v216_v12, %v210_v11  ;;  %v221_v17 = vadd.s32 %v217_v13, %v210_v11  ;;  %s226_s28 = sadd.s32 2246822507, %s225_s27  ;;  %s526_s27 = smov [#allocation4]  }
  0x18   : > { %v222_v18 = vadd.s32 %v218_v14, %v210_v11  ;;  %v223_v19 = vadd.s32 %v219_v15, %v210_v11  ;;  %v227_v20 = vstv %s226_s28  ;;  %s156_s29 = scalar_select %p155_p10, %s601_s25, 7 }
  0x19   : > { %v228_v21 = vxor.u32 %v227_v20, %v220_v16  ;;  %v229_v22 = vxor.u32 %v227_v20, %v221_v17  ;;  %s683_s25 = smov (!%p161_p11, %s601_s25), 63  ;;  %p464_p13 = pnand %p463_p12, %p590_p5 }
  0x1a   : > { %v230_v23 = vxor.u32 %v227_v20, %v222_v18  ;;  %v231_v24 = vxor.u32 %v227_v20, %v223_v19  ;;  %s408_s30 = sshll.u32 %s156_s29, 1  ;;  %s163_s9 = scalar_lea.vmem %s674_s2, %s683_s25 }
  0x1b   : > { %v232_v25 = vshrl.u32 %v228_v21, 16  ;;  %v233_v26 = vshrl.u32 %v229_v22, 16  ;;  %s158_s6 = scalar_lea.vmem %s673_s1, %s408_s30  ;;  %v410_v6 = vld [vmem:[%s163_s9] ss:$0 sm:$0xff]  ;;  %v411_v10 = vld [vmem:[%s163_s9 + $0x1] ss:$0 sm:$0xff]  ;;  %s623_s25 = scalar_lea.hbm %s675_s3, %s420_s18 }
  0x1c   : > { %v234_v27 = vshrl.u32 %v230_v23, 16  ;;  %v235_v28 = vshrl.u32 %v231_v24, 16  ;;  %v166_v5 = vld [vmem:[%s158_s6] sm:$0x3]  ;;  %v167_v8 = vld [vmem:[%s158_s6 + $0x2] sm:$0x3]  ;;  %p465_p0 = pneg %p464_p13 }
  0x1d   : > { %v236_v29 = vxor.u32 %v232_v25, %v228_v21  ;;  %v237_v30 = vxor.u32 %v233_v26, %v229_v22  ;;  %v168_v15 = vld [vmem:[%s158_s6 + $0x4] sm:$0x3]  ;;  %v412_v16 = vld [vmem:[%s163_s9 + $0x2] ss:$0 sm:$0xff]  ;;  %v169_v18 = vld [vmem:[%s158_s6 + $0x6] sm:$0x3] }
  0x1e   : > { %v238_v31 = vxor.u32 %v234_v27, %v230_v23  ;;  %v239_v32 = vxor.u32 %v235_v28, %v231_v24  ;;  %v413_v19 = vld [vmem:[%s163_s9 + $0x3] ss:$0 sm:$0xff]  ;;  %v198_v23 = vadd.f32 %v410_v6, %v166_v5  ;;  %v199_v24 = vadd.f32 %v411_v10, %v167_v8  ;;  %s466_s28 = sshll.u32 %s526_s27, 4  ;;  %s467_s28 = int_to_ptr.vmem [resolvable:$false] %s466_s28 }
  0x1f   : > { %v240_v33 = vmul.u32 2146121005, %v236_v29  ;;  %v241_v34 = vmul.u32 2146121005, %v237_v30  ;;  %v200_v29 = vadd.f32 %v412_v16, %v168_v15  ;;  %v201_v30 = vadd.f32 %v413_v19, %v169_v18  ;;  %s468_s29 = scalar_lea.vmem %s467_s28, 256  ;;  %p469_p1 = scmp.lt.s32.totalorder %s618_s13, %s467_s28 }
  0x20   : > { %v242_v35 = vmul.u32 2146121005, %v238_v31  ;;  %v243_v36 = vmul.u32 2146121005, %v239_v32  ;;  %p470_p2 = scmp.lt.s32.totalorder %s468_s29, %s462_s26 }
  0x21   : > { %v244_v37 = vshrl.u32 %v240_v33, 15  ;;  %v245_v38 = vshrl.u32 %v241_v34, 15 }
  0x22   : > { %v246_v39 = vshrl.u32 %v242_v35, 15  ;;  %v247_v40 = vshrl.u32 %v243_v36, 15  ;;  %p471_p3 = por %p470_p2, %p469_p1 }
  0x23   : > { %v248_v41 = vxor.u32 %v244_v37, %v240_v33  ;;  %v249_v42 = vxor.u32 %v245_v38, %v241_v34 }
  0x24   : > { %v250_v43 = vxor.u32 %v246_v39, %v242_v35  ;;  %v251_v44 = vxor.u32 %v247_v40, %v243_v36  ;;  %v304_v35 = vmul.f32 1.1111112, %v198_v23  ;;  %v305_v36 = vmul.f32 1.1111112, %v199_v24  ;;  %p472_p4 = pnand %p471_p3, %p465_p0 }
  0x25   : > { %v252_v45 = vmul.u32 2221713035, %v248_v41  ;;  %v253_v46 = vmul.u32 2221713035, %v249_v42  ;;  %v306_v41 = vmul.f32 1.1111112, %v200_v29 }
  0x26   : > { %v254_v47 = vmul.u32 2221713035, %v250_v43  ;;  %v255_v48 = vmul.u32 2221713035, %v251_v44  ;;  %v307_v42 = vmul.f32 1.1111112, %v201_v30 }
  0x27   : > { %v256_v49 = vshrl.u32 %v252_v45, 16  ;;  %v257_v50 = vshrl.u32 %v253_v46, 16 }
  0x28   : > { %v258_v51 = vshrl.u32 %v254_v47, 16  ;;  %v259_v52 = vshrl.u32 %v255_v48, 16 }
  0x29   : > { %v260_v53 = vxor.u32 %v256_v49, %v252_v45  ;;  %v261_v54 = vxor.u32 %v257_v50, %v253_v46 }
  0x2a   : > { %v262_v55 = vxor.u32 %v258_v51, %v254_v47  ;;  %v263_v56 = vxor.u32 %v259_v52, %v255_v48 }
  0x2b   : > { %v264_v57 = vadd.s32 2654435769, %v260_v53  ;;  %v265_v58 = vadd.s32 2654435769, %v261_v54 }
  0x2c   : > { %v266_v59 = vadd.s32 2654435769, %v262_v55  ;;  %v267_v60 = vadd.s32 2654435769, %v263_v56 }
  0x2d   : > { %v268_v61 = vshrl.u32 %v264_v57, 16  ;;  %v269_v62 = vshrl.u32 %v265_v58, 16 }
  0x2e   : > { %v270_v63 = vshrl.u32 %v266_v59, 16  ;;  %v271_v0 = vshrl.u32 %v267_v60, 16 }
  0x2f   : > { %v272_v1 = vxor.u32 %v268_v61, %v264_v57  ;;  %v273_v2 = vxor.u32 %v269_v62, %v265_v58 }
  0x30   : > { %v274_v3 = vxor.u32 %v270_v63, %v266_v59  ;;  %v275_v4 = vxor.u32 %v271_v0, %v267_v60 }
  0x31   : > { %v276_v7 = vmul.u32 2146121005, %v272_v1  ;;  %v277_v9 = vmul.u32 2146121005, %v273_v2 }
  0x32   : > { %v278_v11 = vmul.u32 2146121005, %v274_v3  ;;  %v279_v12 = vmul.u32 2146121005, %v275_v4 }
  0x33   : > { %v280_v13 = vshrl.u32 %v276_v7, 15  ;;  %v281_v14 = vshrl.u32 %v277_v9, 15 }
  0x34   : > { %v282_v17 = vshrl.u32 %v278_v11, 15  ;;  %v283_v20 = vshrl.u32 %v279_v12, 15 }
  0x35   : > { %v284_v21 = vxor.u32 %v280_v13, %v276_v7  ;;  %v285_v22 = vxor.u32 %v281_v14, %v277_v9 }
  0x36   : > { %v286_v25 = vxor.u32 %v282_v17, %v278_v11  ;;  %v287_v26 = vxor.u32 %v283_v20, %v279_v12 }
  0x37   : > { %v288_v27 = vmul.u32 2221713035, %v284_v21  ;;  %v289_v28 = vmul.u32 2221713035, %v285_v22 }
  0x38   : > { %v290_v31 = vmul.u32 2221713035, %v286_v25  ;;  %v291_v32 = vmul.u32 2221713035, %v287_v26 }
  0x39   : > { %v292_v33 = vshrl.u32 %v288_v27, 16  ;;  %v293_v34 = vshrl.u32 %v289_v28, 16 }
  0x3a   : > { %v294_v37 = vshrl.u32 %v290_v31, 16  ;;  %v295_v38 = vshrl.u32 %v291_v32, 16 }
  0x3b   : > { %v296_v39 = vxor.u32 %v292_v33, %v288_v27  ;;  %v297_v40 = vxor.u32 %v293_v34, %v289_v28 }
  0x3c   : > { %v298_v43 = vxor.u32 %v294_v37, %v290_v31  ;;  %v299_v44 = vxor.u32 %v295_v38, %v291_v32 }
  0x3d   : > { %vm300_vm1 = vcmp.ge.u32.totalorder %v296_v39, 429496730  ;;  %vm301_vm2 = vcmp.ge.u32.totalorder %v297_v40, 429496730 }
  0x3e   : > { %v308_v45 = vsel %vm300_vm1, %v304_v35, 0.0  ;;  %v309_v46 = vsel %vm301_vm2, %v305_v36, 0.0  ;;  %vm302_vm3 = vcmp.ge.u32.totalorder %v298_v43, 429496730  ;;  %vm303_vm4 = vcmp.ge.u32.totalorder %v299_v44, 429496730 }
  0x3f   : > { %313 = vst.msk [vmem:[%s153_s12] sm:$0x3] %vm312_vm0, %v308_v45  ;;  %314 = vst.msk [vmem:[%s153_s12 + $0x2] sm:$0x3] %vm312_vm0, %v309_v46  ;;  %v310_v47 = vsel %vm302_vm3, %v306_v41, 0.0  ;;  %v311_v48 = vsel %vm303_vm4, %v307_v42, 0.0 }
  0x40   : > { %315 = vst.msk [vmem:[%s153_s12 + $0x4] sm:$0x3] %vm312_vm0, %v310_v47  ;;  %316 = vst.msk [vmem:[%s153_s12 + $0x6] sm:$0x3] %vm312_vm0, %v311_v48 }
  0x41   : > { %475 = shalt.err (!%p472_p4)
}
  0x42   : > { %s476_s30 = scalar_lea.hbm %s623_s25, 128  ;;  %s480_s6 = scalar_lea.hbm %s675_s3, 256 }
  0x43   : > { %p477_p7 = scmp.ne.s32.totalorder %s623_s25, %s476_s30  ;;  %p481_p10 = scmp.lt.u32.totalorder %s623_s25, %s675_s3 }
  0x44   : > { %p482_p11 = scmp.lt.u32.totalorder %s480_s6, %s476_s30  ;;  %p484_p13 = scmp.lt.u32.totalorder %s476_s30, %s623_s25 }
  0x45   : > { %p478_p8 = pnand %p477_p7, %p590_p5 }
  0x46   : > { %p483_p12 = por %p482_p11, %p481_p10 }
  0x47   : > { %p479_p9 = pneg %p478_p8 }
  0x48   : > { %p485_p0 = por %p484_p13, %p483_p12 }
  0x4a   : > { %p486_p1 = pnand %p485_p0, %p479_p9 }
  0x4c   : > { %489 = shalt.err (!%p486_p1)
}
  0x4d   : > { %s527_s9 = smov 32   ;;  %s528_s10 = smov 2  }
  0x4e   : > { %421 = dma.vmem_to_hbm [thread:$0]  (%p590_p5), %s618_s13, 128, %s623_s25, %s631_s0, %s527_s9, %s527_s9, %s528_s10  }
  0x4f PF: > { %p427_p2 = scmp.ge.s32.totalorder %s524_s17, 2  ;;  %s346_s11 = sand.u32 1, %s512_s14  }
  0x50   : > { %s347_s12 = scalar_lea.sflag [#allocation5], %s346_s11 }
  0x51   : > { %p424_p3 = pnand %p427_p2, %p594_p6 }
  0x53   : > { %507 = dma.done.wait (!%p424_p3), %s347_s12, 128  }
  0x54   : > { %509 = vsyncadd (!%p424_p3), %s347_s12, 4294967168  ;;  %p14_p4 = scmp.ge.s32.totalorder %s577_s19, 4   ;;  %s678_s14 = smov %s516_s15 }
  0x55   : > { %s679_s15 = smov %s520_s16  ;;  %s680_s16 = smov %s588_s22 }
  0x56   : > { %s681_s17 = smov %s577_s19  ;;  %16 = sbr.rel (!%p14_p4) target bundleno = 5 (0x5), region = 66 }
  0x5d   :  { %352 = vsyncpa [#allocation5], 1 }
  0x5e   :  { %354 = vsyncpa [#allocation5 + $0x1], 1 }

</bundles_post_ra>
